<compile_context>
chip_gen: v6e
topology: v6e:2x2x1
jax: 0.10.0
libtpu: 0.0.40
codegen_flags: <defaults>
</compile_context>

<pallas_src>
import jax
import jax.numpy as jnp
import numpy as np
from jax.experimental import pallas as pl
from jax.experimental.pallas import tpu as pltpu


def _bag_of_word_kernel(var_ref, len_ref, out_ref):
    # var_ref: (TB, L, H)  activation block
    # len_ref: (TB, 1, 1)  int32 lengths block
    # out_ref: (TB, 1, H)  pooled context block
    v = var_ref[...].astype(jnp.float32)                    # (TB, L, H)
    lens = len_ref[...]                                     # (TB, 1, 1) int32
    tb, seq_len, _ = v.shape

    # valid[b, t] = t < lengths[b]
    pos = jax.lax.broadcasted_iota(jnp.int32, (tb, seq_len, 1), 1)
    valid = pos < lens                                      # (TB, L, 1)

    # softmax of (ones with -inf at padding) == 1/length on valid positions.
    # approx=False: one reciprocal per batch element, exactness is free here.
    inv_len = pl.reciprocal(jnp.maximum(lens, 1).astype(jnp.float32),
                            approx=False)                   # (TB, 1, 1)
    w = jnp.where(valid, inv_len, jnp.float32(0.0))         # (TB, L, 1)

    # context = A @ variable  (masked mean over the sequence axis)
    ctx = jnp.sum(v * w, axis=1, keepdims=True)             # (TB, 1, H)
    out_ref[...] = ctx.astype(out_ref.dtype)


def _pick_block_b(B, L, H, itemsize, target_bytes=2 << 20):
    """Largest divisor of B whose (TB, L, H) tile stays under target_bytes,
    while keeping at least 2 grid steps when B >= 2 (v7x dual-TensorCore)."""
    if B <= 1:
        return 1
    cap = max(1, min(B // 2, target_bytes // max(1, L * H * itemsize)))
    tb = 1
    for d in range(1, cap + 1):
        if B % d == 0:
            tb = d
    return tb


def bag_of_word(variable, lengths, *, block_b=None):
    """variable: (B, L, H), lengths: (B,) int -> context: (B, H)."""
    B, L, H = variable.shape
    itemsize = jnp.dtype(variable.dtype).itemsize
    lengths3 = lengths.astype(jnp.int32).reshape(B, 1, 1)

    if block_b is None:
        block_b = _pick_block_b(B, L, H, itemsize)
    assert B % block_b == 0, "batch block must divide B"
    grid = (B // block_b,)

    cost = pl.CostEstimate(
        flops=2 * B * L * H,
        transcendentals=B,
        bytes_accessed=B * L * H * itemsize + B * 4 + B * H * itemsize,
    )

    out = pl.pallas_call(
        _bag_of_word_kernel,
        out_shape=jax.ShapeDtypeStruct((B, 1, H), variable.dtype),
        grid_spec=pltpu.PrefetchScalarGridSpec(
            num_scalar_prefetch=0,
            grid=grid,
            in_specs=[
                pl.BlockSpec((block_b, L, H), lambda i: (i, 0, 0)),  # variable
                pl.BlockSpec((block_b, 1, 1), lambda i: (i, 0, 0)),  # lengths
            ],
            out_specs=pl.BlockSpec((block_b, 1, H), lambda i: (i, 0, 0)),
        ),
        compiler_params=pltpu.CompilerParams(
            dimension_semantics=("parallel",),
        ),
        cost_estimate=cost,
    )(variable, lengths3)

    return out.reshape(B, H)  # context.squeeze(1)


def _reference(variable, lengths):
    """Pure-JAX mirror of BagOfWord.forward (UniformAttention path)."""
    B, L, H = variable.shape
    pos = jnp.arange(L)[None, :]
    pad_mask = pos >= lengths[:, None]                 # True at padded positions
    atten = jnp.where(pad_mask, -jnp.inf, 1.0)         # (B, L)
    w = jax.nn.softmax(atten, axis=-1)                 # (B, L)
    return jnp.einsum("bl,blh->bh", w, variable)       # (B, H)


if __name__ == "__main__":
    B, L, H = 2, 8, 32
    key = jax.random.PRNGKey(0)
    k_var, k_len = jax.random.split(key)

    variable = jax.random.normal(k_var, (B, L, H), dtype=jnp.float32)
    lengths = jax.random.randint(k_len, (B,), 1, L + 1, dtype=jnp.int32)

    out = bag_of_word(variable, lengths)
    out = jax.block_until_ready(out)

    ref = _reference(variable, lengths)
    np.testing.assert_allclose(np.asarray(out), np.asarray(ref),
                               rtol=1e-5, atol=1e-5)

    print("KERNEL_OK")
</pallas_src>

<mosaic_0001>
module attributes {stable_mosaic.version = 11 : i64} {
  func.func @_bag_of_word_kernel(%arg0: i32, %arg1: memref<1x8x32xf32, #tpu.memory_space<vmem>>, %arg2: memref<1x1x1xi32, #tpu.memory_space<vmem>>, %arg3: memref<1x1x32xf32, #tpu.memory_space<vmem>>) attributes {dimension_semantics = [#tpu.dimension_semantics<parallel>], iteration_bounds = array<i64: 2>, scalar_prefetch = 0 : i64, scratch_operands = 0 : i64, tpu.core_type = #tpu.core_type<tc>, window_params = [{transform_indices = @transform_0, window_bounds = array<i64: 1, 8, 32>}, {transform_indices = @transform_1, window_bounds = array<i64: 1, 1, 1>}, {transform_indices = @transform_2, window_bounds = array<i64: 1, 1, 32>}]} {
    %c0 = arith.constant 0 : index
    %c0_0 = arith.constant 0 : index
    %c0_1 = arith.constant 0 : index
    %0 = vector.load %arg1[%c0, %c0_0, %c0_1] : memref<1x8x32xf32, #tpu.memory_space<vmem>>, vector<1x8x32xf32>
    %c0_2 = arith.constant 0 : index
    %c0_3 = arith.constant 0 : index
    %c0_4 = arith.constant 0 : index
    %1 = vector.load %arg2[%c0_2, %c0_3, %c0_4] : memref<1x1x1xi32, #tpu.memory_space<vmem>>, vector<1x1x1xi32>
    %2 = tpu.iota {dimensions = array<i32: 1>} : vector<1x8x1xi32>
    %3 = vector.broadcast %1 : vector<1x1x1xi32> to vector<1x8x1xi32>
    %4 = arith.cmpi slt, %2, %3 : vector<1x8x1xi32>
    %c1_i32 = arith.constant 1 : i32
    %5 = vector.broadcast %c1_i32 : i32 to vector<1x1x1xi32>
    %6 = arith.maxsi %1, %5 : vector<1x1x1xi32>
    %7 = arith.sitofp %6 : vector<1x1x1xi32> to vector<1x1x1xf32>
    %8 = tpu.reciprocal %7 : vector<1x1x1xf32> -> vector<1x1x1xf32>
    %cst = arith.constant 0.000000e+00 : f32
    %9 = vector.shape_cast %8 : vector<1x1x1xf32> to vector<1x1x1xf32>
    %10 = vector.broadcast %9 : vector<1x1x1xf32> to vector<1x8x1xf32>
    %11 = vector.broadcast %cst : f32 to vector<1x8x1xf32>
    %12 = arith.select %4, %10, %11 : vector<1x8x1xi1>, vector<1x8x1xf32>
    %13 = vector.broadcast %12 : vector<1x8x1xf32> to vector<1x8x32xf32>
    %14 = arith.mulf %0, %13 : vector<1x8x32xf32>
    %cst_5 = arith.constant dense<0.000000e+00> : vector<1x32xf32>
    %15 = vector.multi_reduction <add>, %14, %cst_5 [1] : vector<1x8x32xf32> to vector<1x32xf32>
    %16 = vector.shape_cast %15 : vector<1x32xf32> to vector<1x1x32xf32>
    %c0_6 = arith.constant 0 : index
    %c0_7 = arith.constant 0 : index
    %c0_8 = arith.constant 0 : index
    %17 = vector.load %arg3[%c0_6, %c0_7, %c0_8] : memref<1x1x32xf32, #tpu.memory_space<vmem>>, vector<1x1x32xf32>
    tpu.vector_store %arg3[%c0_6, %c0_7, %c0_8], %16 {strides = array<i32>} : memref<1x1x32xf32, #tpu.memory_space<vmem>>, vector<1x1x32xf32>,
    return
  }
  func.func @transform_0(%arg0: i32) -> (i32, i32, i32) {
    %c0_i32 = arith.constant 0 : i32
    %c0_i32_0 = arith.constant 0 : i32
    %c0_i32_1 = arith.constant 0 : i32
    return %arg0, %c0_i32, %c0_i32_0 : i32, i32, i32
  }
  func.func @transform_1(%arg0: i32) -> (i32, i32, i32) {
    %c0_i32 = arith.constant 0 : i32
    %c0_i32_0 = arith.constant 0 : i32
    %c0_i32_1 = arith.constant 0 : i32
    return %arg0, %c0_i32, %c0_i32_0 : i32, i32, i32
  }
  func.func @transform_2(%arg0: i32) -> (i32, i32, i32) {
    %c0_i32 = arith.constant 0 : i32
    %c0_i32_0 = arith.constant 0 : i32
    %c0_i32_1 = arith.constant 0 : i32
    return %arg0, %c0_i32, %c0_i32_0 : i32, i32, i32
  }
}

</mosaic_0001>

<bundles_post_ra>
// kernel: tpu_custom_call.1
= control target key start
LH: loop header
LB: loop body
LE: loop exit
PB: predicated region body
PF: predicated region fallthrough
CT: control target
= control target key end

     0   :  { %7 = vsyncpa [#allocation3], 0  ;;  %s615_s0 = inlined_call_operand.hbm [shape: f32[2,8,32], index: 0, kind: input, shape index: {}]   ;;  %s616_s1 = inlined_call_operand.vmem [shape: s32[2,1,1], index: 1, kind: input, shape index: {}]   ;;  %s617_s2 = inlined_call_operand.hbm [shape: f32[2,1,32], index: 2, kind: output, shape index: {}]  }
   0x1   :  { %9 = vsyncpa [#allocation3 + $0x1], 0 }
   0x2   :  { %10 = vsyncpa [#allocation4], 0 }
   0x3   :  { %12 = vsyncpa [#allocation4 + $0x1], 0  ;;  %s468_s9 = smov 0   ;;  %s470_s10 = smov 0  }
   0x4   :  { %s472_s11 = smov 0   ;;  %s474_s12 = smov 0  }
   0x5 LB: > { %s489_s13 = sadd.s32 4294967295, %s448_s12   ;;  %s296_s14 = sadd.s32 4294967294, %s448_s12   ;;  %s448_s12 = sphi %s474_s12, %s634_s12   ;;  %s444_s11 = sphi %s472_s11, %s633_s11   ;;  %s440_s10 = sphi %s470_s10, %s632_s10   ;;  %s436_s9 = sphi %s468_s9, %s631_s9  }
   0x6   : > { %s493_s15 = sadd.s32 1, %s448_s12   ;;  %s25_s16 = sadd.s32 1, %s444_s11 }
   0x7   : > { %s22_s17 = ssub.s32 %s448_s12, %s493_s15  ;;  %p32_p0 = scmp.ne.s32.totalorder %s444_s11, %s440_s10 }
   0x8   : > { %p23_p1 = scmp.eq.s32.totalorder %s22_s17, 0  ;;  %p33_p2 = scmp.eq.s32.totalorder %s448_s12, 0 }
   0x9   : > { %p38_p3 = scmp.ne.s32.totalorder %s440_s10, %s436_s9  ;;  %p39_p4 = scmp.eq.s32.totalorder %s489_s13, 0 }
   0xa   : > { %s505_s18 = scalar_select %p23_p1, %s444_s11, %s25_s16  }
   0xb   : > { %p507_p5 = por %p33_p2, %p32_p0  ;;  %p511_p6 = por %p39_p4, %p38_p3 }
   0xc   : > { %p88_p7 = scmp.eq.s32.totalorder %s489_s13, 1  ;;  %p94_p8 = scmp.eq.s32.totalorder %s296_s14, 1 }
   0xd   : > { %s621_s20 = scalar_select %p511_p6, 1, 0 }
   0xe   : > { %p318_p10 = scmp.lt.s32.totalorder %s448_s12, 2  ;;  %p518_p11 = por %p88_p7, %p32_p0 }
   0xf   : > { %p522_p12 = por %p94_p8, %p38_p3  ;;  %s114_s23 = sand.u32 1, %s444_s11  }
  0x10   : > { %s622_s21 = scalar_select %p518_p11, 1, 0 }
  0x11   : > { %s623_s22 = scalar_select %p522_p12, 1, 0 }
  0x12   : > { %s300_s24 = sshll.u32 %s448_s12, 7  ;;  %s299_s25 = sshll.u32 %s114_s23, 3 }
  0x13   : > { %s531_s28 = scalar_lea.hbm %s615_s0, %s300_s24  ;;  %s118_s29 = scalar_lea.vmem [#allocation2], %s299_s25 }
  0x14   : > { %s125_s30 = sshll.u32 %s118_s29, 4  ;;  %p535_p13 = pnand %p318_p10, %p507_p5  ;;  %s539_s30 = int_to_ptr.vmem [resolvable:$true] %s125_s30 }
  0x15   : > { %s115_s4 = scalar_lea.sflag [#allocation3], %s114_s23  ;;  %s356_s5 = scalar_lea.hbm %s531_s28, 128 }
  0x16   : > { %p357_p2 = scmp.ne.s32.totalorder %s531_s28, %s356_s5  ;;  %p358_p3 = pneg %p535_p13 }
  0x17   : > { %s361_s8 = scalar_lea.hbm %s615_s0, 256  ;;  %p362_p5 = scmp.lt.s32.totalorder %s531_s28, %s615_s0 }
  0x18   : > { %p359_p4 = pnand %p358_p3, %p357_p2  ;;  %p363_p8 = scmp.lt.s32.totalorder %s361_s8, %s356_s5 }
  0x1a   : > { %p360_p7 = pneg %p359_p4  ;;  %p364_p10 = por %p363_p8, %p362_p5 }
  0x1c   : > { %p365_p9 = pnand %p364_p10, %p360_p7 }
  0x1e   : > { %368 = shalt.err (!%p365_p9)
}
  0x1f   : > { %s369_s17 = scalar_lea.vmem %s539_s30, 128  ;;  %s450_s19 = smov [#allocation2]  }
  0x20   : > { %p370_p0 = scmp.ne.s32.totalorder %s539_s30, %s369_s17  ;;  %s374_s23 = sshll.u32 %s450_s19, 4  ;;  %s375_s23 = int_to_ptr.vmem [resolvable:$false] %s374_s23 }
  0x21   : > { %s376_s24 = scalar_lea.vmem %s375_s23, 256  ;;  %p377_p4 = scmp.lt.s32.totalorder %s539_s30, %s375_s23 }
  0x22   : > { %p372_p1 = pnand %p370_p0, %p358_p3  ;;  %p378_p12 = scmp.lt.s32.totalorder %s376_s24, %s369_s17 }
  0x24   : > { %p373_p2 = pneg %p372_p1  ;;  %p379_p11 = por %p378_p12, %p377_p4 }
  0x26   : > { %p380_p6 = pnand %p379_p11, %p373_p2 }
  0x28   : > { %383 = shalt.err (!%p380_p6)
}
  0x29   : > { %313 = dma.hbm_to_vmem [thread:$0]  (!%p535_p13), %s531_s28, 128, %s539_s30, %s115_s4  }
  0x2a   : > { %p625_p9 = scmp.lt.s32.totalorder %s448_s12, 3  ;;  %p626_p7 = scmp.ge.s32.totalorder %s448_s12, 1 }
  0x2c   : > { %p137_p0 = pnand %p626_p7, %p625_p9 }
  0x2d   : > { %s566_s25 = sand.u32 (!%p137_p0), 1, %s440_s10   ;;  %p627_p6 = scmp.ne.s32.totalorder (!%p137_p0), %s621_s20, 0 }
  0x2e   : > { %140 = sbr.rel (%p137_p0) target bundleno = 231 (0xe7), region = 28  ;;  %s302_s26 = sshll.u32 (!%p137_p0), %s566_s25, 3 }
  0x2f   : > { %s143_s27 = scalar_lea.sflag (!%p137_p0), [#allocation3], %s566_s25  ;;  %s146_s29 = scalar_lea.vmem (!%p137_p0), [#allocation2], %s302_s26 }
  0x33   : > { %427 = dma.done.wait (%p627_p6), %s143_s27, 128  }
  0x34   : > { %429 = vsyncadd (%p627_p6), %s143_s27, 4294967168  ;;  %p169_p11 = scmp.lt.s32.totalorder %s489_s13, 1  ;;  %v451_v0 = vmov 0   ;;  %v174_v2 = vlaneseq  ;;  %v172_v11 = vld [vmem:[%s146_s29] sm:$0xff]  ;;  %vm198_vm2 = vcmask 261120   ;;  %s303_s20 = sshll.u32 %s489_s13, 4 }
  0x35   : > { %353 = vset.pattern.permute.xlu0 %v451_v0  ;;  %s168_s5 = scalar_lea.vmem [#allocation5], %s566_s25  ;;  %vm206_vm3 = vcmask 253952   ;;  %s219_s14 = scalar_lea.hbm %s617_s2, %s303_s20 }
  0x36   : > { %s170_s28 = scalar_select %p169_p11, %s489_s13, 1  ;;  %v175_v5 = vshrl.u32 %v174_v2, 7 }
  0x37   : > { %s221_s6 = sshll.u32 %s168_s5, 4  ;;  %s209_s16 = scalar_lea.sflag [#allocation4], %s566_s25  ;;  %s222_s6 = int_to_ptr.vmem [resolvable:$true] %s221_s6 }
  0x38   : > { %s171_s4 = scalar_lea.vmem %s616_s1, %s170_s28  ;;  %v178_v6 = vsub.s32 0, %v175_v5  ;;  %s384_s17 = scalar_lea.vmem %s222_s6, 16 }
  0x39   : > { %v173_v1 = vld [vmem:[%s171_s4] sm:$0x1]  ;;  %p385_p12 = scmp.ne.s32.totalorder %s222_s6, %s384_s17  ;;  %p628_p13 = scmp.ne.s32.totalorder %s622_s21, 0 }
  0x3a   : > { %vm181_vm0 = vcmp.gt.s32.totalorder %v173_v1, 1  ;;  %v179_v7 = vrot.slane %v173_v1, %v178_v6  ;;  %s452_s19 = smov [#allocation5]  }
  0x3b   : > { %v182_v3 = vsel %vm181_vm0, %v173_v1, 1  ;;  %p386_p1 = pnand %p385_p12, %p628_p13  ;;  %s388_s23 = sshll.u32 %s452_s19, 4  ;;  %s389_s23 = int_to_ptr.vmem [resolvable:$false] %s388_s23 }
  0x3c   : > { %v183_v4 = vcvt.s32.f32 %v182_v3  ;;  %vm180_vm1 = vcmp.lt.s32.totalorder %v175_v5, %v179_v7  ;;  %s390_s13 = scalar_lea.vmem %s389_s23, 32  ;;  %p391_p5 = scmp.lt.s32.totalorder %s222_s6, %s389_s23 }
  0x3d   : > { %p387_p3 = pneg %p386_p1  ;;  %p392_p8 = scmp.lt.s32.totalorder %s390_s13, %s384_s17 }
  0x3e   : > { %354 = vrcp.f32 %v183_v4 }
  0x3f   : > { %p393_p10 = por %p392_p8, %p391_p5 }
  0x41   : > { %p394_p2 = pnand %p393_p10, %p387_p3 }
  0x4b   : > { %v355_v8 = vpop.eup %354 }
  0x4c   : > { %v189_v9 = vrot.slane %v355_v8, %v178_v6 }
  0x4e   : > { %v191_v10 = vsel %vm180_vm1, %v189_v9, 0.0 }
  0x4f   : > { %194 = vperm.xlu0 %353, %v191_v10  }
  0xca   : > { %v195_v12 = vpop.permute.xlu0 %194 }
  0xcb   : > { %v197_v13 = vmul.f32 %v195_v12, %v172_v11 }
  0xcd   : > { %v199_v14 = vsel %vm198_vm2, %v197_v13, 0.0 }
  0xce   : > { %v200_v15 = vrot.slane %v199_v14, 4 }
  0xd0   : > { %v201_v16 = vadd.f32 %v200_v15, %v199_v14 }
  0xd2   : > { %v202_v17 = vrot.slane %v201_v16, 2 }
  0xd4   : > { %v203_v18 = vadd.f32 %v202_v17, %v201_v16 }
  0xd6   : > { %v204_v19 = vrot.slane %v203_v18, 1 }
  0xd8   : > { %v205_v20 = vadd.f32 %v204_v19, %v203_v18 }
  0xda   : > { %207 = vst.msk [vmem:[%s168_s5] sm:$0x1] %vm206_vm3, %v205_v20 }
  0xdb   : > { %397 = shalt.err (!%p394_p2)
}
  0xdc   : > { %s398_s24 = scalar_lea.hbm %s219_s14, 16  ;;  %s402_s27 = scalar_lea.hbm %s617_s2, 32 }
  0xdd   : > { %p399_p4 = scmp.ne.s32.totalorder %s219_s14, %s398_s24  ;;  %p403_p0 = scmp.lt.s32.totalorder %s219_s14, %s617_s2 }
  0xde   : > { %p404_p6 = scmp.lt.s32.totalorder %s402_s27, %s398_s24 }
  0xdf   : > { %p400_p9 = pnand %p399_p4, %p628_p13 }
  0xe0   : > { %p405_p11 = por %p404_p6, %p403_p0 }
  0xe1   : > { %p401_p7 = pneg %p400_p9 }
  0xe3   : > { %p406_p12 = pnand %p405_p11, %p401_p7 }
  0xe5   : > { %409 = shalt.err (!%p406_p12)
}
  0xe6   : > { %308 = dma.vmem_to_hbm [thread:$0]  (%p628_p13), %s222_s6, 16, %s219_s14, %s209_s16  }
  0xe7 PF: > { %s233_s30 = sand.u32 1, %s436_s9   ;;  %p629_p1 = scmp.ne.s32.totalorder %s623_s22, 0 }
  0xe8   : > { %p630_p3 = scmp.ge.s32.totalorder %s448_s12, 2  ;;  %s234_s3 = scalar_lea.sflag [#allocation4], %s233_s30 }
  0xea   : > { %p315_p5 = pnand %p630_p3, %p629_p1 }
  0xec   : > { %p316_p8 = pneg %p315_p5 }
  0xee   : > { %431 = dma.done.wait (%p316_p8), %s234_s3, 16  }
  0xef   : > { %433 = vsyncadd (%p316_p8), %s234_s3, 4294967280  ;;  %p15_p10 = scmp.ge.s32.totalorder %s493_s15, 4   ;;  %s631_s9 = smov %s440_s10 }
  0xf0   : > { %s632_s10 = smov %s444_s11  ;;  %s633_s11 = smov %s505_s18 }
  0xf1   : > { %s634_s12 = smov %s493_s15  ;;  %17 = sbr.rel (!%p15_p10) target bundleno = 5 (0x5), region = 76 }
  0xf6   :  { %238 = vsyncpa [#allocation3], 1 }
  0xf7   :  { %240 = vsyncpa [#allocation3 + $0x1], 1 }
  0xf8   :  { %241 = vsyncpa [#allocation4], 1 }
  0xf9   :  { %243 = vsyncpa [#allocation4 + $0x1], 1 }

</bundles_post_ra>
